<compile_context>
chip_gen: v7x
topology: tpu7x:2x2x1
jax: 0.10.0
libtpu: 0.0.40
codegen_flags: <defaults>
</compile_context>

<pallas_src>
import functools

import jax
import jax.numpy as jnp
from jax.experimental import pallas as pl
from jax.experimental.pallas import tpu as pltpu


def _auto_regressive_kernel(cp_ref, wf_ref, bf_ref, w2sel_ref, b2_ref,
                            pro_ref, x3_ref, *, C, P):
    # cp_ref block: (1, C+P, D) -> one instance's stacked [c_list ; p_list]
    cp = cp_ref[0]                                                  # (C+P, D)

    # ---- single fused MXU matmul for both projections (l1 and lp) --------
    h = jnp.dot(cp, wf_ref[...],
                preferred_element_type=jnp.float32)                 # (C+P, 2*h_d)
    hr = jnp.maximum(h + bf_ref[...], 0.0)                          # ReLU

    # ---- final projection l2, lane-major ---------------------------------
    # w2sel row 0 = [w2^T | 0], row 1 = [0 | w2^T]  ->  lg[0, r] = w2·ReLU(l1(x_r)),
    # lg[1, r] = w2·ReLU(lp(x_r)).  Result is (2, C+P), rows in lanes (no concat,
    # no sublane relayout, output already lane-major).
    lg = jax.lax.dot_general(
        w2sel_ref[...], hr,
        dimension_numbers=(((1,), (1,)), ((), ())),
        preferred_element_type=jnp.float32)                         # (2, C+P)

    # p-branch: mean over the P rows; mean commutes with the linear l2, so it
    # is applied after the projection (constant 1/P multiply, no division).
    logit_p = jnp.sum(lg[1:2, C:], axis=1, keepdims=True) * (1.0 / P)   # (1, 1)

    # assemble (1, C+1) logit row: lanes 0..C-1 = c-branch, lane C = p-branch
    col = jax.lax.broadcasted_iota(jnp.int32, (1, C + 1), 1)
    x3 = jnp.where(col < C, lg[0:1, :C + 1], logit_p) + b2_ref[...]     # (1, C+1)

    # ---- stable softmax over the C+1 logits (lane axis) ------------------
    m = jnp.max(x3, axis=1, keepdims=True)
    e = jnp.exp(x3 - m)
    pro = e * pl.reciprocal(jnp.sum(e, axis=1, keepdims=True), approx=False)

    x3_ref[0] = x3
    pro_ref[0] = pro


def fuse_params(params):
    """Static (once-per-model) fusion of weights for the kernel."""
    h_d = params["w1"].shape[1]
    w_fused = jnp.concatenate([params["w1"], params["wp"]], axis=1)   # (D, 2*h_d)
    b_fused = jnp.concatenate([params["b1"], params["bp"]], axis=1)   # (1, 2*h_d)
    w2_row = params["w2"].reshape(1, h_d)                             # (1, h_d)
    zeros = jnp.zeros_like(w2_row)
    w2sel = jnp.concatenate(
        [jnp.concatenate([w2_row, zeros], axis=1),
         jnp.concatenate([zeros, w2_row], axis=1)], axis=0)           # (2, 2*h_d)
    b2 = params["b2"].reshape(1, 1)                                   # (1, 1)
    return {"w_fused": w_fused, "b_fused": b_fused, "w2sel": w2sel, "b2": b2}


def auto_regressive_forward(c, p, fused):
    """c: (B, C, D) stacked c_lists, p: (B, P, D) stacked p_lists.

    Returns (pro_list, x3), each of shape (B, C+1, 1)."""
    B, C, D = c.shape
    P = p.shape[1]
    two_h = fused["w_fused"].shape[1]

    # One operand for the fused projection matmul.
    cp = jnp.concatenate([c, p], axis=1)                              # (B, C+P, D)

    kernel = functools.partial(_auto_regressive_kernel, C=C, P=P)

    grid_spec = pltpu.PrefetchScalarGridSpec(
        num_scalar_prefetch=0,
        grid=(B,),
        in_specs=[
            pl.BlockSpec((1, C + P, D), lambda i: (i, 0, 0)),   # per-instance rows
            pl.BlockSpec((D, two_h), lambda i: (0, 0)),         # fused weights
            pl.BlockSpec((1, two_h), lambda i: (0, 0)),         # fused biases
            pl.BlockSpec((2, two_h), lambda i: (0, 0)),         # l2 selector rows
            pl.BlockSpec((1, 1), lambda i: (0, 0)),             # l2 bias
        ],
        out_specs=(
            pl.BlockSpec((1, 1, C + 1), lambda i: (i, 0, 0)),   # pro (lane-major)
            pl.BlockSpec((1, 1, C + 1), lambda i: (i, 0, 0)),   # x3  (lane-major)
        ),
    )

    pro, x3 = pl.pallas_call(
        kernel,
        out_shape=(jax.ShapeDtypeStruct((B, 1, C + 1), jnp.float32),
                   jax.ShapeDtypeStruct((B, 1, C + 1), jnp.float32)),
        grid_spec=grid_spec,
        compiler_params=pltpu.CompilerParams(
            dimension_semantics=("parallel",)),
    )(cp, fused["w_fused"], fused["b_fused"], fused["w2sel"], fused["b2"])

    # PyTorch-style per-instance (C+1, 1) column outputs.
    return pro.reshape(B, C + 1, 1), x3.reshape(B, C + 1, 1)


def init_params(key, gnn_output_dim):
    """Deterministic PyTorch-Linear-style init: U(-1/sqrt(fan_in), 1/sqrt(fan_in))."""
    h_d = gnn_output_dim // 2
    ks = jax.random.split(key, 6)

    def lin(kw, kb, fan_in, fan_out):
        bound = 1.0 / (fan_in ** 0.5)
        w = jax.random.uniform(kw, (fan_in, fan_out), jnp.float32, -bound, bound)
        b = jax.random.uniform(kb, (1, fan_out), jnp.float32, -bound, bound)
        return w, b

    w1, b1 = lin(ks[0], ks[1], gnn_output_dim, h_d)   # self.l1
    wp, bp = lin(ks[2], ks[3], gnn_output_dim, h_d)   # self.lp
    w2, b2 = lin(ks[4], ks[5], h_d, 1)                # self.l2
    # TODO(synk): BatchNorm1d layers b1/bp exist in __init__ but are unused in forward.
    return {"w1": w1, "b1": b1, "wp": wp, "bp": bp, "w2": w2, "b2": b2}


def reference_forward(c, p, params):
    """Straightforward batched JAX reference of the PyTorch formula."""
    ps = jnp.maximum(jnp.einsum('bpd,dh->bph', p, params["wp"]) + params["bp"],
                     0.0).mean(axis=1, keepdims=True)                 # (B, 1, h_d)
    cs = jnp.maximum(jnp.einsum('bcd,dh->bch', c, params["w1"]) + params["b1"],
                     0.0)                                             # (B, C, h_d)
    feats = jnp.concatenate([cs, ps], axis=1)                         # (B, C+1, h_d)
    x3 = jnp.einsum('brh,ho->bro', feats, params["w2"]) + params["b2"]
    pro = jax.nn.softmax(x3, axis=1)
    return pro, x3


if __name__ == "__main__":
    gnn_output_dim = 32     # D
    C = 8                   # len(c_list)
    P = 6                   # len(p_list)
    B = 4                   # number of independent instances (batched)

    key = jax.random.PRNGKey(0)
    k_params, k_c, k_p = jax.random.split(key, 3)

    params = init_params(k_params, gnn_output_dim)
    fused = fuse_params(params)
    c = jax.random.normal(k_c, (B, C, gnn_output_dim), jnp.float32)
    p = jax.random.normal(k_p, (B, P, gnn_output_dim), jnp.float32)

    pro_list, x3 = auto_regressive_forward(c, p, fused)
    pro_list, x3 = jax.block_until_ready((pro_list, x3))

    pro_ref, x3_ref = reference_forward(c, p, params)
    # Tolerance 1e-3: the kernel applies the (linear) l2 projection before the
    # p-branch mean (mathematically identical); under TPU default matmul
    # precision this reordering can differ from the reference by ~1e-4.
    assert jnp.allclose(x3, x3_ref, atol=1e-3, rtol=1e-3)
    assert jnp.allclose(pro_list, pro_ref, atol=1e-3, rtol=1e-3)
    # Softmax sanity: each instance's probabilities sum to 1.
    assert jnp.allclose(jnp.sum(pro_list, axis=1), 1.0, atol=1e-5)
    assert pro_list.shape == (B, C + 1, 1) and x3.shape == (B, C + 1, 1)

    print("KERNEL_OK")
</pallas_src>

<mosaic_0001>
module attributes {stable_mosaic.version = 11 : i64} {
  func.func @_auto_regressive_kernel(%arg0: i32, %arg1: memref<1x14x32xf32, #tpu.memory_space<vmem>>, %arg2: memref<32x32xf32, #tpu.memory_space<vmem>>, %arg3: memref<1x32xf32, #tpu.memory_space<vmem>>, %arg4: memref<2x32xf32, #tpu.memory_space<vmem>>, %arg5: memref<1x1xf32, #tpu.memory_space<vmem>>, %arg6: memref<1x1x9xf32, #tpu.memory_space<vmem>>, %arg7: memref<1x1x9xf32, #tpu.memory_space<vmem>>) attributes {dimension_semantics = [#tpu.dimension_semantics<parallel>], iteration_bounds = array<i64: 4>, scalar_prefetch = 0 : i64, scratch_operands = 0 : i64, tpu.core_type = #tpu.core_type<tc>, window_params = [{transform_indices = @transform_0, window_bounds = array<i64: 1, 14, 32>}, {pipeline_mode = #tpu.pipeline_mode<synchronous>, transform_indices = @transform_1, window_bounds = array<i64: 32, 32>}, {pipeline_mode = #tpu.pipeline_mode<synchronous>, transform_indices = @transform_2, window_bounds = array<i64: 1, 32>}, {pipeline_mode = #tpu.pipeline_mode<synchronous>, transform_indices = @transform_3, window_bounds = array<i64: 2, 32>}, {pipeline_mode = #tpu.pipeline_mode<synchronous>, transform_indices = @transform_4, window_bounds = array<i64: 1, 1>}, {transform_indices = @transform_5, window_bounds = array<i64: 1, 1, 9>}, {transform_indices = @transform_6, window_bounds = array<i64: 1, 1, 9>}]} {
    %c0 = arith.constant 0 : index
    %c0_0 = arith.constant 0 : index
    %c0_1 = arith.constant 0 : index
    %0 = vector.load %arg1[%c0, %c0_0, %c0_1] : memref<1x14x32xf32, #tpu.memory_space<vmem>>, vector<1x14x32xf32>
    %1 = vector.shape_cast %0 : vector<1x14x32xf32> to vector<14x32xf32>
    %c0_2 = arith.constant 0 : index
    %c0_3 = arith.constant 0 : index
    %2 = vector.load %arg2[%c0_2, %c0_3] : memref<32x32xf32, #tpu.memory_space<vmem>>, vector<32x32xf32>
    %cst = arith.constant dense<0.000000e+00> : vector<14x32xf32>
    %3 = tpu.matmul %1, %2, %cst {dimension_numbers = #tpu.dot_dimension_numbers<[1], [0], [0], [1], [0, 0, 1, 1], [], []>} : vector<14x32xf32>, vector<32x32xf32>, vector<14x32xf32> -> vector<14x32xf32>
    %c0_4 = arith.constant 0 : index
    %c0_5 = arith.constant 0 : index
    %4 = vector.load %arg3[%c0_4, %c0_5] : memref<1x32xf32, #tpu.memory_space<vmem>>, vector<1x32xf32>
    %5 = vector.broadcast %4 : vector<1x32xf32> to vector<14x32xf32>
    %6 = arith.addf %3, %5 : vector<14x32xf32>
    %cst_6 = arith.constant 0.000000e+00 : f32
    %7 = vector.broadcast %cst_6 : f32 to vector<14x32xf32>
    %8 = arith.maximumf %6, %7 : vector<14x32xf32>
    %c0_7 = arith.constant 0 : index
    %c0_8 = arith.constant 0 : index
    %9 = vector.load %arg4[%c0_7, %c0_8] : memref<2x32xf32, #tpu.memory_space<vmem>>, vector<2x32xf32>
    %cst_9 = arith.constant dense<0.000000e+00> : vector<2x14xf32>
    %10 = tpu.matmul %9, %8, %cst_9 {dimension_numbers = #tpu.dot_dimension_numbers<[1], [1], [0], [0], [0, 0, 1, 0], [], []>} : vector<2x32xf32>, vector<14x32xf32>, vector<2x14xf32> -> vector<2x14xf32>
    %11 = vector.extract_strided_slice %10 {offsets = [1, 8], sizes = [1, 6], strides = [1, 1]} : vector<2x14xf32> to vector<1x6xf32>
    %cst_10 = arith.constant dense<0.000000e+00> : vector<1xf32>
    %12 = vector.multi_reduction <add>, %11, %cst_10 [1] : vector<1x6xf32> to vector<1xf32>
    %13 = vector.shape_cast %12 : vector<1xf32> to vector<1x1xf32>
    %cst_11 = arith.constant 0.166666672 : f32
    %14 = vector.broadcast %cst_11 : f32 to vector<1x1xf32>
    %15 = arith.mulf %13, %14 : vector<1x1xf32>
    %16 = tpu.iota {dimensions = array<i32: 1>} : vector<1x9xi32>
    %c8_i32 = arith.constant 8 : i32
    %17 = vector.broadcast %c8_i32 : i32 to vector<1x9xi32>
    %18 = arith.cmpi slt, %16, %17 : vector<1x9xi32>
    %19 = vector.extract_strided_slice %10 {offsets = [0, 0], sizes = [1, 9], strides = [1, 1]} : vector<2x14xf32> to vector<1x9xf32>
    %20 = vector.shape_cast %15 : vector<1x1xf32> to vector<1x1xf32>
    %21 = vector.broadcast %20 : vector<1x1xf32> to vector<1x9xf32>
    %22 = arith.select %18, %19, %21 : vector<1x9xi1>, vector<1x9xf32>
    %c0_12 = arith.constant 0 : index
    %c0_13 = arith.constant 0 : index
    %23 = vector.load %arg5[%c0_12, %c0_13] : memref<1x1xf32, #tpu.memory_space<vmem>>, vector<1x1xf32>
    %24 = vector.broadcast %23 : vector<1x1xf32> to vector<1x9xf32>
    %25 = arith.addf %22, %24 : vector<1x9xf32>
    %cst_14 = arith.constant dense<0xFF800000> : vector<1xf32>
    %26 = vector.multi_reduction <maximumf>, %25, %cst_14 [1] : vector<1x9xf32> to vector<1xf32>
    %27 = vector.shape_cast %26 : vector<1xf32> to vector<1x1xf32>
    %28 = vector.broadcast %27 : vector<1x1xf32> to vector<1x9xf32>
    %29 = arith.subf %25, %28 : vector<1x9xf32>
    %30 = math.exp %29 : vector<1x9xf32>
    %cst_15 = arith.constant dense<0.000000e+00> : vector<1xf32>
    %31 = vector.multi_reduction <add>, %30, %cst_15 [1] : vector<1x9xf32> to vector<1xf32>
    %32 = vector.shape_cast %31 : vector<1xf32> to vector<1x1xf32>
    %33 = tpu.reciprocal %32 : vector<1x1xf32> -> vector<1x1xf32>
    %34 = vector.broadcast %33 : vector<1x1xf32> to vector<1x9xf32>
    %35 = arith.mulf %30, %34 : vector<1x9xf32>
    %c0_16 = arith.constant 0 : index
    %c0_17 = arith.constant 0 : index
    %c0_18 = arith.constant 0 : index
    %36 = vector.load %arg7[%c0_16, %c0_17, %c0_18] : memref<1x1x9xf32, #tpu.memory_space<vmem>>, vector<1x1x9xf32>
    %37 = vector.shape_cast %36 : vector<1x1x9xf32> to vector<1x9xf32>
    %38 = vector.shape_cast %25 : vector<1x9xf32> to vector<1x1x9xf32>
    tpu.vector_store %arg7[%c0_16, %c0_17, %c0_18], %38 {strides = array<i32>} : memref<1x1x9xf32, #tpu.memory_space<vmem>>, vector<1x1x9xf32>,
    %c0_19 = arith.constant 0 : index
    %c0_20 = arith.constant 0 : index
    %c0_21 = arith.constant 0 : index
    %39 = vector.load %arg6[%c0_19, %c0_20, %c0_21] : memref<1x1x9xf32, #tpu.memory_space<vmem>>, vector<1x1x9xf32>
    %40 = vector.shape_cast %39 : vector<1x1x9xf32> to vector<1x9xf32>
    %41 = vector.shape_cast %35 : vector<1x9xf32> to vector<1x1x9xf32>
    tpu.vector_store %arg6[%c0_19, %c0_20, %c0_21], %41 {strides = array<i32>} : memref<1x1x9xf32, #tpu.memory_space<vmem>>, vector<1x1x9xf32>,
    return
  }
  func.func @transform_0(%arg0: i32) -> (i32, i32, i32) {
    %c0_i32 = arith.constant 0 : i32
    %c0_i32_0 = arith.constant 0 : i32
    %c0_i32_1 = arith.constant 0 : i32
    return %arg0, %c0_i32, %c0_i32_0 : i32, i32, i32
  }
  func.func @transform_1(%arg0: i32) -> (i32, i32) {
    %c0_i32 = arith.constant 0 : i32
    %c0_i32_0 = arith.constant 0 : i32
    %c0_i32_1 = arith.constant 0 : i32
    return %c0_i32, %c0_i32_0 : i32, i32
  }
  func.func @transform_2(%arg0: i32) -> (i32, i32) {
    %c0_i32 = arith.constant 0 : i32
    %c0_i32_0 = arith.constant 0 : i32
    %c0_i32_1 = arith.constant 0 : i32
    return %c0_i32, %c0_i32_0 : i32, i32
  }
  func.func @transform_3(%arg0: i32) -> (i32, i32) {
    %c0_i32 = arith.constant 0 : i32
    %c0_i32_0 = arith.constant 0 : i32
    %c0_i32_1 = arith.constant 0 : i32
    return %c0_i32, %c0_i32_0 : i32, i32
  }
  func.func @transform_4(%arg0: i32) -> (i32, i32) {
    %c0_i32 = arith.constant 0 : i32
    %c0_i32_0 = arith.constant 0 : i32
    %c0_i32_1 = arith.constant 0 : i32
    return %c0_i32, %c0_i32_0 : i32, i32
  }
  func.func @transform_5(%arg0: i32) -> (i32, i32, i32) {
    %c0_i32 = arith.constant 0 : i32
    %c0_i32_0 = arith.constant 0 : i32
    %c0_i32_1 = arith.constant 0 : i32
    return %arg0, %c0_i32, %c0_i32_0 : i32, i32, i32
  }
  func.func @transform_6(%arg0: i32) -> (i32, i32, i32) {
    %c0_i32 = arith.constant 0 : i32
    %c0_i32_0 = arith.constant 0 : i32
    %c0_i32_1 = arith.constant 0 : i32
    return %arg0, %c0_i32, %c0_i32_0 : i32, i32, i32
  }
}

</mosaic_0001>

<bundles_post_ra>
// kernel: tpu_custom_call.1
= control target key start
LH: loop header
LB: loop body
LE: loop exit
PB: predicated region body
PF: predicated region fallthrough
CT: control target
= control target key end

     0   :  { %s1003_s0 = inlined_call_operand.vmem [shape: f32[4,14,32], index: 0, kind: input, shape index: {}]   ;;  %s1004_s1 = inlined_call_operand.vmem [shape: f32[32,32], index: 1, kind: input, shape index: {}]   ;;  %s1005_s2 = inlined_call_operand.vmem [shape: f32[1,32], index: 2, kind: input, shape index: {}]   ;;  %s1006_s3 = inlined_call_operand.vmem [shape: f32[2,32], index: 3, kind: input, shape index: {}]   ;;  %s1007_s4 = inlined_call_operand.<no memory space> [shape: f32[1,1], index: 4, kind: input, shape index: {}]   ;;  %s1008_s5 = inlined_call_operand.hbm [shape: f32[4,1,9], index: 5, kind: output, shape index: {0}]   ;;  %s1009_s6 = inlined_call_operand.hbm [shape: f32[4,1,9], index: 6, kind: output, shape index: {1}]  }
   0x1   :  { %v12_v0 = vstv %s1007_s4 }
   0x2   :  { %13 = vst [vmem:[#allocation2] sm:$0x1] %v12_v0 }
   0x3   :  { %14 = vsyncpa [#allocation4], 0 }
   0x4   :  { %16 = vsyncpa [#allocation4 + $0x1], 0 }
   0x5   :  { %17 = vsyncpa [#allocation6], 0 }
   0x6   :  { %19 = vsyncpa [#allocation6 + $0x1], 0  ;;  %s844_s23 = smov 0   ;;  %s846_s24 = smov 0  }
   0x7   :  { %s848_s25 = smov 0   ;;  %s850_s26 = smov 0  }
   0x8 LB: > { %s865_s4 = sadd.s32 4294967295, %s797_s26   ;;  %s592_s27 = sadd.s32 4294967294, %s797_s26   ;;  %s797_s26 = sphi %s850_s26, %s1015_s26   ;;  %s793_s25 = sphi %s848_s25, %s1014_s25   ;;  %s789_s24 = sphi %s846_s24, %s1013_s24   ;;  %s785_s23 = sphi %s844_s23, %s1012_s23  }
   0x9   : > { %s869_s28 = sadd.s32 1, %s797_s26   ;;  %s142_s29 = sadd.s32 1, %s793_s25 }
   0xa   : > { %s139_s30 = ssub.s32 %s797_s26, %s869_s28  ;;  %p152_p0 = scmp.ne.s32.totalorder %s793_s25, %s789_s24 }
   0xb   : > { %p140_p1 = scmp.eq.s32.totalorder %s139_s30, 0  ;;  %p153_p2 = scmp.eq.s32.totalorder %s865_s4, 3 }
   0xc   : > { %p158_p3 = scmp.ne.s32.totalorder %s789_s24, %s785_s23  ;;  %p159_p4 = scmp.eq.s32.totalorder %s592_s27, 3 }
   0xd   : > { %s880_s7 = scalar_select %p140_p1, %s793_s25, %s142_s29  }
   0xe   : > { %p882_p5 = por %p153_p2, %p152_p0  ;;  %p886_p6 = por %p159_p4, %p158_p3 }
   0xf   : > { %p595_p7 = scmp.ge.s32.totalorder %s797_s26, 1  ;;  %p223_p8 = scmp.lt.s32.totalorder %s797_s26, 5 }
  0x11   : > { %p224_p9 = pnand %p595_p7, %p223_p8 }
  0x12   : > { %v263_v1 = vld [vmem:[%s1004_s1] sm:$0xff] (!%p224_p9)  ;;  %v264_v2 = vld [vmem:[%s1004_s1 + $0x8] sm:$0xff] (!%p224_p9)  ;;  %v265_v3 = vld [vmem:[%s1004_s1 + $0x10] sm:$0xff] (!%p224_p9)  ;;  %p256_p10 = scmp.lt.s32.totalorder (!%p224_p9), %s865_s4, 3  ;;  %vm274_vm0 = vcmask (!%p224_p9), 261120   ;;  %v799_v9 = vmov (!%p224_p9), 0.0|0.0   ;;  %v447_v26 = vlaneseq (!%p224_p9) }
  0x13   : > { %227 = sbr.rel (%p224_p9) target bundleno = 1063 (0x427), region = 40  ;;  %v636_v4 = vpack.c.bf16 (!%p224_p9), %v264_v2, %v263_v1  ;;  %v266_v5 = vld [vmem:[%s1004_s1 + $0x18] sm:$0xff] (!%p224_p9)  ;;  %644 = vmatprep.subr.bf16.mxu1 (!%p224_p9), %v799_v9  ;;  %vm800_vm1 = vmmov (!%p224_p9), 0   ;;  %v801_v10 = vmov (!%p224_p9), 0.0   ;;  %v598_v11 = vld [vmem:[%s1005_s2] ss:$0 sm:$0xff] (!%p224_p9)  ;;  %vm646_vm2 = vmpackc.low (!%p224_p9), %vm274_vm0, %vm274_vm0 }
  0x14   : > { %v640_v6 = vpack.c.bf16 (!%p224_p9), %v266_v5, %v265_v3  ;;  %633 = vmatprep.mubr.msk.f32.mxu1 (!%p224_p9), %vm800_vm1, %v801_v10  ;;  %v358_v19 = vld [vmem:[%s1006_s3] sm:$0x3] (!%p224_p9)  ;;  %v802_v21 = vmov (!%p224_p9), 0   ;;  %s803_s11 = smov (!%p224_p9), 120   ;;  %vm442_vm3 = vcmask (!%p224_p9), 41985   ;;  %v461_v27 = vshrl.u32 (!%p224_p9), %v447_v26, 7 }
  0x15   : > { %637 = vmatprep.subr.bf16.mxu0 (!%p224_p9), %v636_v4  ;;  %v454_v20 = vld [vmem:[#allocation2] sm:$0x1] (!%p224_p9)  ;;  %697 = vset.pattern.permute.xlu1 (!%p224_p9), %v802_v21  ;;  %v448_v28 = vand.u32 (!%p224_p9), 127, %v447_v26  ;;  %s921_s12 = sand.u32 (!%p224_p9), 1, %s789_s24   ;;  %vm465_vm5 = vcmask (!%p224_p9), 65536   ;;  %s604_s14 = sshll.u32 (!%p224_p9), %s865_s4, 4 }
  0x16   : > { %639 = vmatpush3.bf16.msra.mxu0 (!%p224_p9), %v636_v4  ;;  %698 = vset.pattern.permute.xlu0 (!%p224_p9), %v802_v21  ;;  %v462_v29 = vsub.s32 (!%p224_p9), 0, %v461_v27  ;;  %s255_s13 = scalar_lea.vmem (!%p224_p9), [#allocation5], %s921_s12  ;;  %s933_s17 = scalar_lea.hbm (!%p224_p9), %s1009_s6, %s604_s14 }
  0x17   : > { %641 = vmatprep.subr.bf16.mxu0 (!%p224_p9), %v640_v6  ;;  %457 = vperm.xlu1 (!%p224_p9), %697, %v454_v20   ;;  %vm449_vm4 = vcmp.lt.s32.totalorder (!%p224_p9), %v448_v28, 8  ;;  %s804_s21 = smov (!%p224_p9), [#allocation5]  }
  0x1a   : > { %s257_s18 = scalar_select %p256_p10, %s865_s4, 3  ;;  %643 = vmatpush3.bf16.msra.mxu0 %v640_v6 }
  0x1c   : > { %s608_s19 = sshll.u32 %s257_s18, 4  ;;  %s509_s18 = sshll.u32 %s255_s13, 4  ;;  %s510_s18 = int_to_ptr.vmem [resolvable:$true] %s509_s18 }
  0x1d   : > { %s260_s22 = scalar_lea.vmem %s1003_s0, %s608_s19  ;;  %s484_s19 = scalar_lea.sflag [#allocation6], %s921_s12 }
  0x1e   : > { %v261_v7 = vld [vmem:[%s260_s22] sm:$0xff]  ;;  %v262_v8 = vld [vmem:[%s260_s22 + $0x8] sm:$0x3f]  ;;  %s703_s20 = scalar_lea.vmem %s510_s18, 16  ;;  %s707_s22 = sshll.u32 %s804_s21, 4  ;;  %s708_s22 = int_to_ptr.vmem [resolvable:$false] %s707_s22 }
  0x1f   : > { %626 = vmatprep.mubr.msk.f32.mxu0 %vm274_vm0, %v261_v7  ;;  %p704_p11 = scmp.ne.s32.totalorder %s510_s18, %s703_s20  ;;  %s709_s27 = scalar_lea.vmem %s708_s22, 32 }
  0x20   : > { %627 = vmatmul.mubr.msk.f32.vlgmr.msra.gmra.mrb[0].mxu0 %vm274_vm0, %v262_v8  ;;  %p710_p0 = scmp.lt.s32.totalorder %s510_s18, %s708_s22  ;;  %p711_p1 = scmp.lt.s32.totalorder %s709_s27, %s703_s20 }
  0x21   : > { %p705_p12 = pnand %p704_p11, %p882_p5 }
  0x22   : > { %p712_p2 = por %p711_p1, %p710_p0 }
  0x23   : > { %p706_p13 = pneg %p705_p12 }
  0x25   : > { %p713_p3 = pnand %p712_p2, %p706_p13 }
  0x96   : > { %v458_v30 = vpop.permute.xlu1 %457 }
  0x97   : > { %v463_v33 = vrot.slane %v458_v30, %v462_v29 }
  0xf3   : > { %v628_v12 = vpop.f32.mrb[0].mxu0 }
  0xf4   : > { %v353_v13 = vadd.f32 %v628_v12, %v598_v11  ;;  %v347_v14 = vpop.f32.mrb[1].mxu0 }
  0xf5   : > { %v348_v15 = vadd.f32 %v598_v11, %v347_v14 }
  0xf6   : > { %v357_v16 = vmax.f32 %v353_v13, 0.0 }
  0xf7   : > { %v356_v17 = vmax.f32 %v348_v15, 0.0 }
  0xf9   : > { %v645_v18 = vpack.c.bf16 %v357_v16, %v356_v17 }
  0xfb   : > { %647 = vmatpush3.bf16.xpose.msk.msra.mxu1 %vm646_vm2, %v645_v18 }
 0x102   : > { %634 = vmatmul.mubr.msk.f32.vlgmr.msra.gmra.mrb[0].mxu1 %vm274_vm0, %v358_v19 }
 0x1d5   : > { %v434_v22 = vpop.f32.mrb[0].mxu1 }
 0x1d6   : > { %439 = vrot.lane.b32.xlu0 %v434_v22, %s803_s11  ;;  %v635_v23 = vpop.f32.mrb[1].mxu1 }
 0x248   : > { %v440_v24 = vpop.permute.xlu0 %439 }
 0x249   : > { %v443_v25 = vsel %vm442_vm3, %v440_v24, 0.0 }
 0x24a   : > { %444 = vadd.xlane.f32.xlu0 %v443_v25 }
 0x2d7   : > { %v445_v31 = vpop.xlane.xlu0 %444 }
 0x2d8   : > { %v446_v32 = vmul.f32 0.16666667, %v445_v31 }
 0x2da   : > { %v451_v34 = vrot.slane %v446_v32, 1 }
 0x2dc   : > { %v453_v35 = vsel %vm449_vm4, %v434_v22, %v451_v34 }
 0x2dd   : > { %v464_v36 = vadd.f32 %v463_v33, %v453_v35 }
 0x2df   : > { %v466_v37 = vsel %vm465_vm5, %v464_v36, -inf  ;;  %477 = vst.msk [vmem:[%s255_s13] sm:$0x1] %vm465_vm5, %v464_v36 }
 0x2e0   : > { %467 = vmax.xlane.f32.xlu1 %v466_v37 }
 0x36d   : > { %v468_v38 = vpop.xlane.xlu1 %467 }
 0x36e   : > { %v469_v39 = vsub.f32 %v464_v36, %v468_v38 }
 0x370   : > { %v470_v40 = vmul.f32 1.442695, %v469_v39 }
 0x372   : > { %699 = vpow2.f32 %v470_v40 }
 0x37c   : > { %v700_v41 = vpop.eup %699 }
 0x37d   : > { %v472_v42 = vsel %vm465_vm5, %v700_v41, 0.0 }
 0x37e   : > { %473 = vadd.xlane.f32.xlu0 %v472_v42 }
 0x37f   : > { %716 = shalt.err (!%p713_p3)
}
 0x380   : > { %s717_s29 = scalar_lea.hbm %s933_s17, 16  ;;  %s721_s11 = scalar_lea.hbm %s1009_s6, 64 }
 0x381   : > { %p718_p4 = scmp.ne.s32.totalorder %s933_s17, %s717_s29  ;;  %p722_p9 = scmp.lt.u32.totalorder %s933_s17, %s1009_s6 }
 0x382   : > { %p723_p10 = scmp.lt.u32.totalorder %s721_s11, %s717_s29  ;;  %p725_p12 = scmp.lt.u32.totalorder %s717_s29, %s933_s17 }
 0x383   : > { %p719_p7 = pnand %p718_p4, %p882_p5 }
 0x384   : > { %p724_p11 = por %p723_p10, %p722_p9 }
 0x385   : > { %p720_p8 = pneg %p719_p7 }
 0x386   : > { %p726_p13 = por %p725_p12, %p724_p11 }
 0x388   : > { %p727_p0 = pnand %p726_p13, %p720_p8 }
 0x38a   : > { %730 = shalt.err (!%p727_p0)
}
 0x38b   : > { %649 = dma.vmem_to_hbm [thread:$0]  (%p882_p5), %s510_s18, 16, %s933_s17, %s484_s19  }
 0x38c   : > { %s249_s16 = scalar_lea.vmem [#allocation3], %s921_s12  ;;  %s959_s27 = scalar_lea.hbm %s1008_s5, %s604_s14 }
 0x38d   : > { %s496_s20 = sshll.u32 %s249_s16, 4  ;;  %s480_s17 = scalar_lea.sflag [#allocation4], %s921_s12  ;;  %s961_s20 = int_to_ptr.vmem [resolvable:$true] %s496_s20 }
 0x38e   : > { %s731_s18 = scalar_lea.vmem %s961_s20, 16  ;;  %s805_s19 = smov [#allocation3]  }
 0x38f   : > { %p732_p1 = scmp.ne.s32.totalorder %s961_s20, %s731_s18  ;;  %s735_s4 = sshll.u32 %s805_s19, 4  ;;  %s736_s4 = int_to_ptr.vmem [resolvable:$false] %s735_s4 }
 0x390   : > { %s737_s29 = scalar_lea.vmem %s736_s4, 32  ;;  %p738_p4 = scmp.lt.s32.totalorder %s961_s20, %s736_s4 }
 0x391   : > { %p733_p2 = pnand %p732_p1, %p882_p5  ;;  %p739_p7 = scmp.lt.s32.totalorder %s737_s29, %s731_s18 }
 0x393   : > { %p734_p3 = pneg %p733_p2  ;;  %p740_p8 = por %p739_p7, %p738_p4 }
 0x395   : > { %p741_p9 = pnand %p740_p8, %p734_p3 }
 0x40b   : > { %v474_v43 = vpop.xlane.xlu0 %473 }
 0x40c   : > { %701 = vrcp.f32 %v474_v43 }
 0x416   : > { %v702_v44 = vpop.eup %701 }
 0x417   : > { %v476_v45 = vmul.f32 %v702_v44, %v700_v41 }
 0x419   : > { %478 = vst.msk [vmem:[%s249_s16] sm:$0x1] %vm465_vm5, %v476_v45 }
 0x41a   : > { %744 = shalt.err (!%p741_p9)
}
 0x41b   : > { %s745_s12 = scalar_lea.hbm %s959_s27, 16  ;;  %s749_s10 = scalar_lea.hbm %s1008_s5, 64 }
 0x41c   : > { %p746_p10 = scmp.ne.s32.totalorder %s959_s27, %s745_s12  ;;  %p750_p13 = scmp.lt.u32.totalorder %s959_s27, %s1008_s5 }
 0x41d   : > { %p751_p0 = scmp.lt.u32.totalorder %s749_s10, %s745_s12  ;;  %p753_p2 = scmp.lt.u32.totalorder %s745_s12, %s959_s27 }
 0x41e   : > { %p747_p11 = pnand %p746_p10, %p882_p5 }
 0x41f   : > { %p752_p1 = por %p751_p0, %p750_p13 }
 0x420   : > { %p748_p12 = pneg %p747_p11 }
 0x421   : > { %p754_p3 = por %p753_p2, %p752_p1 }
 0x423   : > { %p755_p4 = pnand %p754_p3, %p748_p12 }
 0x425   : > { %758 = shalt.err (!%p755_p4)
}
 0x426   : > { %648 = dma.vmem_to_hbm [thread:$0]  (%p882_p5), %s961_s20, 16, %s959_s27, %s480_s17  }
 0x427 PF: > { %p659_p7 = scmp.ge.s32.totalorder %s797_s26, 2  ;;  %s521_s15 = sand.u32 1, %s785_s23  }
 0x428   : > { %s522_s16 = scalar_lea.sflag [#allocation4], %s521_s15 }
 0x429   : > { %p653_p8 = pnand %p659_p7, %p886_p6 }
 0x42b   : > { %776 = dma.done.wait (!%p653_p8), %s522_s16, 16  }
 0x42c   : > { %778 = vsyncadd (!%p653_p8), %s522_s16, 4294967280  ;;  %s530_s21 = scalar_lea.sflag [#allocation6], %s521_s15 }
 0x42d   : > { %780 = dma.done.wait (!%p653_p8), %s530_s21, 16  }
 0x42e   : > { %782 = vsyncadd (!%p653_p8), %s530_s21, 4294967280  ;;  %p22_p5 = scmp.ge.s32.totalorder %s869_s28, 6   ;;  %s1012_s23 = smov %s789_s24 }
 0x42f   : > { %s1013_s24 = smov %s793_s25  ;;  %s1014_s25 = smov %s880_s7 }
 0x430   : > { %s1015_s26 = smov %s869_s28  ;;  %24 = sbr.rel (!%p22_p5) target bundleno = 8 (0x8), region = 92 }
 0x437   :  { %534 = vsyncpa [#allocation4], 1 }
 0x438   :  { %536 = vsyncpa [#allocation4 + $0x1], 1 }
 0x439   :  { %537 = vsyncpa [#allocation6], 1 }
 0x43a   :  { %539 = vsyncpa [#allocation6 + $0x1], 1 }

</bundles_post_ra>
